<compile_context>
chip_gen: v7x
topology: tpu7x:2x2x1
jax: 0.10.0
libtpu: 0.0.40
codegen_flags: <defaults>
</compile_context>

<pallas_src>
import jax
import jax.numpy as jnp
from jax.experimental import pallas as pl
from jax.experimental.pallas import tpu as pltpu

BN_EPS = 1e-5


def _conv_stats_kernel(xe_ref, xo_ref, w_ref, sum_ref, ssq_ref):
    """Pass 1: conv (small matmul) + accumulate per-channel sum / sum-of-squares.

    xe_ref/xo_ref: (1, Cin*K, TL) even/odd conv-position im2col slabs
    w_ref:         (Cout, Cin*K)
    sum_ref/ssq_ref: (Cout, 1) accumulators, resident across the whole grid
    """
    @pl.when(jnp.logical_and(pl.program_id(0) == 0, pl.program_id(1) == 0))
    def _init():
        sum_ref[...] = jnp.zeros_like(sum_ref)
        ssq_ref[...] = jnp.zeros_like(ssq_ref)

    w = w_ref[...]
    ye = jnp.dot(w, xe_ref[0], preferred_element_type=jnp.float32)   # (Cout, TL)
    yo = jnp.dot(w, xo_ref[0], preferred_element_type=jnp.float32)   # (Cout, TL)
    sum_ref[...] += (jnp.sum(ye, axis=1, keepdims=True)
                     + jnp.sum(yo, axis=1, keepdims=True))
    ssq_ref[...] += (jnp.sum(ye * ye, axis=1, keepdims=True)
                     + jnp.sum(yo * yo, axis=1, keepdims=True))


def _norm_relu_pool_kernel(xe_ref, xo_ref, w_ref, scale_ref, shift_ref, o_ref):
    """Pass 2: conv + folded BN (scale/shift) + ReLU + AvgPool1d(2) as pairwise mean.

    o_ref: (1, Cout, TL) pooled output (pooled position on the lane axis)
    """
    w = w_ref[...]
    scale = scale_ref[...]                                            # (Cout, 1)
    shift = shift_ref[...]                                            # (Cout, 1)
    ye = jnp.dot(w, xe_ref[0], preferred_element_type=jnp.float32)    # (Cout, TL)
    yo = jnp.dot(w, xo_ref[0], preferred_element_type=jnp.float32)    # (Cout, TL)
    ye = jnp.maximum(ye * scale + shift, 0.0)
    yo = jnp.maximum(yo * scale + shift, 0.0)
    o_ref[0] = 0.5 * (ye + yo)


def cnn_layer_forward(x, w, b, gamma, beta, *, tile_l=512):
    """x: (N, Cin, L) f32 (PyTorch NCL); w: (Cout, Cin, K); b/gamma/beta: (Cout,).

    Conv bias `b` is accepted for API parity but is mathematically cancelled by the
    training-mode BatchNorm that immediately follows, so it is not used.
    """
    del b
    x = x.astype(jnp.float32)
    N, Cin, L = x.shape
    Cout, _, K = w.shape
    pad = 1
    Lc = L + 2 * pad - K + 1          # conv output length (L+1 for K=2, pad=1)
    Lp = Lc // 2                      # AvgPool1d(2) floor
    CK = Cin * K

    # ---- glue: im2col to (N, Cin*K, Lc): conv position on the lane axis ----
    xp = jnp.pad(x, ((0, 0), (0, 0), (pad, pad)))
    cols = jnp.stack([xp[:, :, k:k + Lc] for k in range(K)], axis=2)   # (N, Cin, K, Lc)
    xT = cols.reshape(N, CK, Lc)
    # de-interleave even/odd conv positions -> kernel pools with a plain add
    xe = xT[:, :, 0::2]               # (N, CK, ceil(Lc/2))  all even positions (for BN stats)
    xo = xT[:, :, 1::2]               # (N, CK, floor(Lc/2))
    Lh = xe.shape[2]                  # >= Lp

    # length tiling on the lane axis (tiles are tiny: fits v7x's 64 MiB with big margin)
    if Lh >= tile_l:
        TL = tile_l
        Lh_pad = -(-Lh // TL) * TL
    else:
        TL = Lh
        Lh_pad = Lh
    xe = jnp.pad(xe, ((0, 0), (0, 0), (0, Lh_pad - xe.shape[2])))
    xo = jnp.pad(xo, ((0, 0), (0, 0), (0, Lh_pad - xo.shape[2])))
    grid = (N, Lh_pad // TL)

    wmat = w.reshape(Cout, CK).astype(jnp.float32)

    # ---- pass 1: per-channel batch sums for BN (zero-padded tiles contribute 0) ----
    sum_c, ssq_c = pl.pallas_call(
        _conv_stats_kernel,
        out_shape=(jax.ShapeDtypeStruct((Cout, 1), jnp.float32),
                   jax.ShapeDtypeStruct((Cout, 1), jnp.float32)),
        grid_spec=pltpu.PrefetchScalarGridSpec(
            num_scalar_prefetch=0,
            grid=grid,
            in_specs=[pl.BlockSpec((1, CK, TL), lambda n, t: (n, 0, t)),
                      pl.BlockSpec((1, CK, TL), lambda n, t: (n, 0, t)),
                      pl.BlockSpec((Cout, CK), lambda n, t: (0, 0))],
            out_specs=[pl.BlockSpec((Cout, 1), lambda n, t: (0, 0)),
                       pl.BlockSpec((Cout, 1), lambda n, t: (0, 0))]),
        compiler_params=pltpu.CompilerParams(
            dimension_semantics=("arbitrary", "arbitrary")),
    )(xe, xo, wmat)

    # ---- glue: fold BN into one per-channel scale/shift (O(Cout) scalars) ----
    count = jnp.float32(N * Lc)
    mean = sum_c[:, 0] / count
    var = jnp.maximum(ssq_c[:, 0] / count - mean * mean, 0.0)   # biased (training-mode) var
    scale = gamma.astype(jnp.float32) * jax.lax.rsqrt(var + BN_EPS)
    shift = beta.astype(jnp.float32) - mean * scale

    # ---- pass 2: conv + BN(scale,shift) + ReLU + pairwise average pool ----
    out_pad = pl.pallas_call(
        _norm_relu_pool_kernel,
        out_shape=jax.ShapeDtypeStruct((N, Cout, Lh_pad), jnp.float32),
        grid_spec=pltpu.PrefetchScalarGridSpec(
            num_scalar_prefetch=0,
            grid=grid,
            in_specs=[pl.BlockSpec((1, CK, TL), lambda n, t: (n, 0, t)),
                      pl.BlockSpec((1, CK, TL), lambda n, t: (n, 0, t)),
                      pl.BlockSpec((Cout, CK), lambda n, t: (0, 0)),
                      pl.BlockSpec((Cout, 1), lambda n, t: (0, 0)),
                      pl.BlockSpec((Cout, 1), lambda n, t: (0, 0))],
            out_specs=pl.BlockSpec((1, Cout, TL), lambda n, t: (n, 0, t))),
        compiler_params=pltpu.CompilerParams(
            dimension_semantics=("parallel", "parallel")),
    )(xe, xo, wmat, scale.reshape(Cout, 1), shift.reshape(Cout, 1))

    # drop padded pooled positions; already in PyTorch layout (N, Cout, Lp)
    return out_pad[:, :, :Lp]


def _reference(x, w, b, gamma, beta):
    """Pure-JAX reference with the module's exact math (conv bias included)."""
    N, Cin, L = x.shape
    Cout, _, K = w.shape
    pad = 1
    Lc = L + 2 * pad - K + 1
    Lp = Lc // 2
    xp = jnp.pad(x, ((0, 0), (0, 0), (pad, pad)))
    cols = jnp.stack([xp[:, :, k:k + Lc] for k in range(K)], axis=-1)
    y = jnp.einsum("nclk,ock->nol", cols, w) + b[None, :, None]
    mean = jnp.mean(y, axis=(0, 2), keepdims=True)
    var = jnp.mean((y - mean) ** 2, axis=(0, 2), keepdims=True)
    y = (y - mean) * jax.lax.rsqrt(var + BN_EPS)
    y = y * gamma[None, :, None] + beta[None, :, None]
    y = jnp.maximum(y, 0.0)
    y = y[:, :, :2 * Lp].reshape(N, Cout, Lp, 2).mean(axis=-1)
    return y


if __name__ == "__main__":
    N, Cin, L = 2, 4, 16
    Cout, K = 8, 2

    key = jax.random.PRNGKey(0)
    kx, kw, kb = jax.random.split(key, 3)

    x = jax.random.normal(kx, (N, Cin, L), dtype=jnp.float32)

    # Conv1d default init: uniform(-1/sqrt(fan_in), 1/sqrt(fan_in)), fan_in = Cin*K
    bound = 1.0 / jnp.sqrt(jnp.float32(Cin * K))
    w = jax.random.uniform(kw, (Cout, Cin, K), jnp.float32, -bound, bound)
    b = jax.random.uniform(kb, (Cout,), jnp.float32, -bound, bound)
    # BatchNorm1d default affine params
    gamma = jnp.ones((Cout,), jnp.float32)
    beta = jnp.zeros((Cout,), jnp.float32)

    out = cnn_layer_forward(x, w, b, gamma, beta)
    out = jax.block_until_ready(out)

    ref = _reference(x, w, b, gamma, beta)
    assert out.shape == (N, Cout, (L + 1) // 2), out.shape
    assert jnp.allclose(out, ref, atol=1e-2, rtol=1e-2), float(jnp.max(jnp.abs(out - ref)))

    print("KERNEL_OK")
</pallas_src>

<mosaic_0001>
module attributes {stable_mosaic.version = 11 : i64} {
  func.func @_conv_stats_kernel(%arg0: i32, %arg1: i32, %arg2: memref<1x8x9xf32, #tpu.memory_space<vmem>>, %arg3: memref<1x8x9xf32, #tpu.memory_space<vmem>>, %arg4: memref<8x8xf32, #tpu.memory_space<vmem>>, %arg5: memref<8x1xf32, #tpu.memory_space<vmem>>, %arg6: memref<8x1xf32, #tpu.memory_space<vmem>>) attributes {dimension_semantics = [#tpu.dimension_semantics<arbitrary>, #tpu.dimension_semantics<arbitrary>], iteration_bounds = array<i64: 2, 1>, scalar_prefetch = 0 : i64, scratch_operands = 0 : i64, tpu.core_type = #tpu.core_type<tc>, window_params = [{transform_indices = @transform_0, window_bounds = array<i64: 1, 8, 9>}, {transform_indices = @transform_1, window_bounds = array<i64: 1, 8, 9>}, {pipeline_mode = #tpu.pipeline_mode<synchronous>, transform_indices = @transform_2, window_bounds = array<i64: 8, 8>}, {pipeline_mode = #tpu.pipeline_mode<synchronous>, transform_indices = @transform_3, window_bounds = array<i64: 8, 1>}, {pipeline_mode = #tpu.pipeline_mode<synchronous>, transform_indices = @transform_4, window_bounds = array<i64: 8, 1>}]} {
    %c0_i32 = arith.constant 0 : i32
    %0 = arith.cmpi eq, %arg0, %c0_i32 : i32
    %c0_i32_0 = arith.constant 0 : i32
    %1 = arith.cmpi eq, %arg1, %c0_i32_0 : i32
    %2 = arith.andi %0, %1 : i1
    %3 = arith.extui %2 : i1 to i32
    %c0_i32_1 = arith.constant 0 : i32
    %4 = arith.cmpi ne, %3, %c0_i32_1 : i32
    scf.if %4 {
      %cst_22 = arith.constant 0.000000e+00 : f32
      %30 = vector.broadcast %cst_22 : f32 to vector<8x1xf32>
      %c0_23 = arith.constant 0 : index
      %c0_24 = arith.constant 0 : index
      %31 = vector.load %arg5[%c0_23, %c0_24] : memref<8x1xf32, #tpu.memory_space<vmem>>, vector<8x1xf32>
      tpu.vector_store %arg5[%c0_23, %c0_24], %30 {strides = array<i32>} : memref<8x1xf32, #tpu.memory_space<vmem>>, vector<8x1xf32>,
      %cst_25 = arith.constant 0.000000e+00 : f32
      %32 = vector.broadcast %cst_25 : f32 to vector<8x1xf32>
      %c0_26 = arith.constant 0 : index
      %c0_27 = arith.constant 0 : index
      %33 = vector.load %arg6[%c0_26, %c0_27] : memref<8x1xf32, #tpu.memory_space<vmem>>, vector<8x1xf32>
      tpu.vector_store %arg6[%c0_26, %c0_27], %32 {strides = array<i32>} : memref<8x1xf32, #tpu.memory_space<vmem>>, vector<8x1xf32>,
    } else {
    }
    %c0 = arith.constant 0 : index
    %c0_2 = arith.constant 0 : index
    %5 = vector.load %arg4[%c0, %c0_2] : memref<8x8xf32, #tpu.memory_space<vmem>>, vector<8x8xf32>
    %c0_3 = arith.constant 0 : index
    %c0_4 = arith.constant 0 : index
    %c0_5 = arith.constant 0 : index
    %6 = vector.load %arg2[%c0_3, %c0_4, %c0_5] : memref<1x8x9xf32, #tpu.memory_space<vmem>>, vector<1x8x9xf32>
    %7 = vector.shape_cast %6 : vector<1x8x9xf32> to vector<8x9xf32>
    %cst = arith.constant dense<0.000000e+00> : vector<8x9xf32>
    %8 = tpu.matmul %5, %7, %cst {dimension_numbers = #tpu.dot_dimension_numbers<[1], [0], [0], [1], [0, 0, 1, 1], [], []>} : vector<8x8xf32>, vector<8x9xf32>, vector<8x9xf32> -> vector<8x9xf32>
    %c0_6 = arith.constant 0 : index
    %c0_7 = arith.constant 0 : index
    %c0_8 = arith.constant 0 : index
    %9 = vector.load %arg3[%c0_6, %c0_7, %c0_8] : memref<1x8x9xf32, #tpu.memory_space<vmem>>, vector<1x8x9xf32>
    %10 = vector.shape_cast %9 : vector<1x8x9xf32> to vector<8x9xf32>
    %cst_9 = arith.constant dense<0.000000e+00> : vector<8x9xf32>
    %11 = tpu.matmul %5, %10, %cst_9 {dimension_numbers = #tpu.dot_dimension_numbers<[1], [0], [0], [1], [0, 0, 1, 1], [], []>} : vector<8x8xf32>, vector<8x9xf32>, vector<8x9xf32> -> vector<8x9xf32>
    %c0_10 = arith.constant 0 : index
    %c0_11 = arith.constant 0 : index
    %12 = vector.load %arg5[%c0_10, %c0_11] : memref<8x1xf32, #tpu.memory_space<vmem>>, vector<8x1xf32>
    %cst_12 = arith.constant dense<0.000000e+00> : vector<8xf32>
    %13 = vector.multi_reduction <add>, %8, %cst_12 [1] : vector<8x9xf32> to vector<8xf32>
    %14 = vector.shape_cast %13 : vector<8xf32> to vector<8x1xf32>
    %cst_13 = arith.constant dense<0.000000e+00> : vector<8xf32>
    %15 = vector.multi_reduction <add>, %11, %cst_13 [1] : vector<8x9xf32> to vector<8xf32>
    %16 = vector.shape_cast %15 : vector<8xf32> to vector<8x1xf32>
    %17 = arith.addf %14, %16 : vector<8x1xf32>
    %18 = arith.addf %12, %17 : vector<8x1xf32>
    %c0_14 = arith.constant 0 : index
    %c0_15 = arith.constant 0 : index
    %19 = vector.load %arg5[%c0_14, %c0_15] : memref<8x1xf32, #tpu.memory_space<vmem>>, vector<8x1xf32>
    tpu.vector_store %arg5[%c0_14, %c0_15], %18 {strides = array<i32>} : memref<8x1xf32, #tpu.memory_space<vmem>>, vector<8x1xf32>,
    %c0_16 = arith.constant 0 : index
    %c0_17 = arith.constant 0 : index
    %20 = vector.load %arg6[%c0_16, %c0_17] : memref<8x1xf32, #tpu.memory_space<vmem>>, vector<8x1xf32>
    %21 = arith.mulf %8, %8 : vector<8x9xf32>
    %cst_18 = arith.constant dense<0.000000e+00> : vector<8xf32>
    %22 = vector.multi_reduction <add>, %21, %cst_18 [1] : vector<8x9xf32> to vector<8xf32>
    %23 = vector.shape_cast %22 : vector<8xf32> to vector<8x1xf32>
    %24 = arith.mulf %11, %11 : vector<8x9xf32>
    %cst_19 = arith.constant dense<0.000000e+00> : vector<8xf32>
    %25 = vector.multi_reduction <add>, %24, %cst_19 [1] : vector<8x9xf32> to vector<8xf32>
    %26 = vector.shape_cast %25 : vector<8xf32> to vector<8x1xf32>
    %27 = arith.addf %23, %26 : vector<8x1xf32>
    %28 = arith.addf %20, %27 : vector<8x1xf32>
    %c0_20 = arith.constant 0 : index
    %c0_21 = arith.constant 0 : index
    %29 = vector.load %arg6[%c0_20, %c0_21] : memref<8x1xf32, #tpu.memory_space<vmem>>, vector<8x1xf32>
    tpu.vector_store %arg6[%c0_20, %c0_21], %28 {strides = array<i32>} : memref<8x1xf32, #tpu.memory_space<vmem>>, vector<8x1xf32>,
    return
  }
  func.func @transform_0(%arg0: i32, %arg1: i32) -> (i32, i32, i32) {
    %c0_i32 = arith.constant 0 : i32
    %c0_i32_0 = arith.constant 0 : i32
    return %arg0, %c0_i32, %arg1 : i32, i32, i32
  }
  func.func @transform_1(%arg0: i32, %arg1: i32) -> (i32, i32, i32) {
    %c0_i32 = arith.constant 0 : i32
    %c0_i32_0 = arith.constant 0 : i32
    return %arg0, %c0_i32, %arg1 : i32, i32, i32
  }
  func.func @transform_2(%arg0: i32, %arg1: i32) -> (i32, i32) {
    %c0_i32 = arith.constant 0 : i32
    %c0_i32_0 = arith.constant 0 : i32
    %c0_i32_1 = arith.constant 0 : i32
    return %c0_i32, %c0_i32_0 : i32, i32
  }
  func.func @transform_3(%arg0: i32, %arg1: i32) -> (i32, i32) {
    %c0_i32 = arith.constant 0 : i32
    %c0_i32_0 = arith.constant 0 : i32
    %c0_i32_1 = arith.constant 0 : i32
    return %c0_i32, %c0_i32_0 : i32, i32
  }
  func.func @transform_4(%arg0: i32, %arg1: i32) -> (i32, i32) {
    %c0_i32 = arith.constant 0 : i32
    %c0_i32_0 = arith.constant 0 : i32
    %c0_i32_1 = arith.constant 0 : i32
    return %c0_i32, %c0_i32_0 : i32, i32
  }
}

</mosaic_0001>

<bundles_post_ra>
// kernel: tpu_custom_call.1
= control target key start
LH: loop header
LB: loop body
LE: loop exit
PB: predicated region body
PF: predicated region fallthrough
CT: control target
= control target key end

     0   :  { %10 = vsyncpa [#allocation3], 0  ;;  %s1032_s0 = inlined_call_operand.hbm [shape: f32[2,8,9], index: 0, kind: input, shape index: {}]   ;;  %s1033_s1 = inlined_call_operand.hbm [shape: f32[2,8,9], index: 1, kind: input, shape index: {}]   ;;  %s1034_s2 = inlined_call_operand.hbm [shape: f32[8,8], index: 2, kind: input, shape index: {}]   ;;  %s1035_s3 = inlined_call_operand.vmem [shape: f32[8,1], index: 3, kind: output, shape index: {0}]   ;;  %s1036_s4 = inlined_call_operand.vmem [shape: f32[8,1], index: 4, kind: output, shape index: {1}]  }
   0x1   :  { %12 = vsyncpa [#allocation3 + $0x1], 0 }
   0x2   :  { %13 = vsyncpa [#allocation5], 0 }
   0x3   :  { %15 = vsyncpa [#allocation5 + $0x1], 0  ;;  %s818_s15 = smov 0   ;;  %s820_s16 = smov 0  }
   0x4   :  { %s822_s17 = smov 0   ;;  %s824_s18 = smov 0  }
   0x5   :  { %s826_s19 = smov 0   ;;  %s828_s20 = smov 0  }
   0x6 LB: > { %s1041_s21 = sadd.s32 4294967295, %s785_s20   ;;  %p55_p0 = scmp.ne.s32.totalorder %s769_s16, %s765_s15  ;;  %s785_s20 = sphi %s828_s20, %s21_s20   ;;  %s781_s19 = sphi %s826_s19, %s1057_s19   ;;  %s777_s18 = sphi %s824_s18, %s1056_s18   ;;  %s773_s17 = sphi %s822_s17, %s1055_s17   ;;  %s769_s16 = sphi %s820_s16, %s1054_s16   ;;  %s765_s15 = sphi %s818_s15, %s1053_s15  }
   0x7   : > { %p850_p1 = scmp.eq.s32.totalorder %s1041_s21, 0  ;;  %p534_p2 = scmp.ge.s32.totalorder %s785_s20, 1 }
   0x8   : > { %p157_p3 = scmp.lt.s32.totalorder %s785_s20, 3  ;;  %s787_s25 = smov [#allocation6]  }
   0x9   : > { %s1042_s22 = scalar_select %p850_p1, 1, 0 }
   0xa   : > { %p858_p4 = por %p850_p1, %p55_p0  ;;  %p862_p5 = pnand %p534_p2, %p157_p3 }
   0xb   : > { %s170_s26 = sshll.u32 %s787_s25, 4  ;;  %s33_s28 = sadd.s32 1, %s781_s19  ;;  %s171_s26 = int_to_ptr.vmem [resolvable:$true] %s170_s26 }
   0xc   : > { %s1043_s23 = scalar_select %p858_p4, 1, 0 }
   0xd   : > { %s1044_s24 = scalar_select %p862_p5, 1, 0 }
   0xe   : > { %p573_p6 = pneg %p862_p5  ;;  %s42_s29 = sadd.s32 1, %s773_s17 }
   0xf   : > { %p876_p8 = scmp.ge.s32.totalorder %s33_s28, 2  ;;  %s639_s7 = scalar_lea.hbm %s1034_s2, 128 }
  0x10   : > { %p870_p7 = pnand %p573_p6, %p850_p1  ;;  %p640_p9 = scmp.ne.s32.totalorder %s1034_s2, %s639_s7 }
  0x11   : > { %s1046_s30 = scalar_select %p876_p8, 1, 0 }
  0x12   : > { %p641_p10 = pneg %p870_p7  ;;  %p646_p13 = scmp.lt.u32.totalorder %s639_s7, %s1034_s2 }
  0x14   : > { %p642_p11 = pnand %p641_p10, %p640_p9 }
  0x16   : > { %p643_p12 = pneg %p642_p11 }
  0x18   : > { %p648_p0 = pnand %p646_p13, %p643_p12 }
  0x1a   : > { %651 = shalt.err (!%p648_p0)
}
  0x1b   : > { %s652_s12 = scalar_lea.vmem %s171_s26, 128  ;;  %p660_p1 = scmp.lt.s32.totalorder %s171_s26, %s171_s26 }
  0x1c   : > { %p653_p2 = scmp.ne.s32.totalorder %s171_s26, %s652_s12  ;;  %p661_p4 = scmp.lt.s32.totalorder %s652_s12, %s652_s12 }
  0x1e   : > { %p655_p3 = pnand %p653_p2, %p641_p10  ;;  %p662_p5 = por %p661_p4, %p660_p1 }
  0x20   : > { %p656_p6 = pneg %p655_p3 }
  0x22   : > { %p663_p8 = pnand %p662_p5, %p656_p6 }
  0x24   : > { %666 = shalt.err (!%p663_p8)
}
  0x25   : > { %576 = dma.hbm_to_vmem [thread:$0]  (!%p870_p7), %s1034_s2, 128, %s171_s26, [#allocation5]  }
  0x26   : > { %p1047_p9 = scmp.ne.s32.totalorder %s1046_s30, 0  ;;  %p49_p1 = scmp.ne.s32.totalorder %s773_s17, %s769_s16 }
  0x27   : > { %p50_p4 = scmp.eq.s32.totalorder %s785_s20, 0  ;;  %p585_p5 = scmp.lt.s32.totalorder %s785_s20, 2 }
  0x28   : > { %s1059_s28 = smov (%p1047_p9, %s33_s28), 0  ;;  %s181_s25 = sand.u32 1, %s773_s17  }
  0x29   : > { %s37_s15 = ssub.s32 %s781_s19, %s1059_s28  ;;  %p51_p10 = por %p50_p4, %p49_p1 }
  0x2a   : > { %p40_p8 = scmp.eq.s32.totalorder %s37_s15, 0  ;;  %s538_s27 = sshll.u32 %s781_s19, 7 }
  0x2b   : > { %s913_s6 = sshll.u32 %s181_s25, 3  ;;  %s918_s26 = scalar_lea.hbm %s1032_s0, %s538_s27 }
  0x2c   : > { %s911_s5 = scalar_select %p40_p8, %s773_s17, %s42_s29  }
  0x2d   : > { %s185_s30 = scalar_lea.vmem [#allocation2], %s913_s6  ;;  %p921_p7 = pnand %p585_p5, %p51_p10 }
  0x2e   : > { %s193_s9 = sshll.u32 %s185_s30, 4  ;;  %s930_s12 = scalar_lea.hbm %s1033_s1, %s538_s27  ;;  %s925_s9 = int_to_ptr.vmem [resolvable:$true] %s193_s9 }
  0x2f   : > { %s182_s13 = scalar_lea.sflag [#allocation3], %s181_s25  ;;  %s667_s14 = scalar_lea.hbm %s918_s26, 128 }
  0x30   : > { %p668_p11 = scmp.ne.s32.totalorder %s918_s26, %s667_s14  ;;  %p669_p12 = pneg %p921_p7 }
  0x31   : > { %s672_s8 = scalar_lea.hbm %s1032_s0, 256  ;;  %p673_p2 = scmp.lt.u32.totalorder %s918_s26, %s1032_s0 }
  0x32   : > { %p670_p13 = pnand %p669_p12, %p668_p11  ;;  %p674_p3 = scmp.lt.u32.totalorder %s672_s8, %s667_s14 }
  0x33   : > { %p676_p9 = scmp.lt.u32.totalorder %s667_s14, %s918_s26 }
  0x34   : > { %p671_p0 = pneg %p670_p13  ;;  %p675_p6 = por %p674_p3, %p673_p2 }
  0x36   : > { %p677_p1 = por %p676_p9, %p675_p6 }
  0x38   : > { %p678_p4 = pnand %p677_p1, %p671_p0 }
  0x3a   : > { %681 = shalt.err (!%p678_p4)
}
  0x3b   : > { %s682_s25 = scalar_lea.vmem %s925_s9, 128  ;;  %s788_s27 = smov [#allocation2]  }
  0x3c   : > { %p683_p5 = scmp.ne.s32.totalorder %s925_s9, %s682_s25  ;;  %s687_s29 = sshll.u32 %s788_s27, 4  ;;  %s688_s29 = int_to_ptr.vmem [resolvable:$false] %s687_s29 }
  0x3d   : > { %s689_s21 = scalar_lea.vmem %s688_s29, 256  ;;  %p690_p11 = scmp.lt.s32.totalorder %s925_s9, %s688_s29 }
  0x3e   : > { %p685_p8 = pnand %p683_p5, %p669_p12  ;;  %p691_p13 = scmp.lt.s32.totalorder %s689_s21, %s682_s25 }
  0x40   : > { %p686_p10 = pneg %p685_p8  ;;  %p692_p2 = por %p691_p13, %p690_p11 }
  0x42   : > { %p693_p3 = pnand %p692_p2, %p686_p10 }
  0x44   : > { %696 = shalt.err (!%p693_p3)
}
  0x45   : > { %580 = dma.hbm_to_vmem [thread:$0]  (!%p921_p7), %s918_s26, 128, %s925_s9, %s182_s13  }
  0x46   : > { %s200_s11 = sand.u32 1, %s785_s20   ;;  %s204_s14 = scalar_lea.vmem [#allocation4], %s913_s6 }
  0x47   : > { %s212_s15 = sshll.u32 %s204_s14, 4  ;;  %s201_s7 = scalar_lea.sflag [#allocation5], %s200_s11  ;;  %s213_s15 = int_to_ptr.vmem [resolvable:$true] %s212_s15 }
  0x48   : > { %s697_s8 = scalar_lea.hbm %s930_s12, 128  ;;  %s702_s27 = scalar_lea.hbm %s1033_s1, 256 }
  0x49   : > { %p698_p0 = scmp.ne.s32.totalorder %s930_s12, %s697_s8  ;;  %p703_p1 = scmp.lt.u32.totalorder %s930_s12, %s1033_s1 }
  0x4a   : > { %p704_p4 = scmp.lt.u32.totalorder %s702_s27, %s697_s8  ;;  %p706_p8 = scmp.lt.u32.totalorder %s697_s8, %s930_s12 }
  0x4b   : > { %p700_p6 = pnand %p698_p0, %p669_p12 }
  0x4c   : > { %p705_p5 = por %p704_p4, %p703_p1 }
  0x4d   : > { %p701_p9 = pneg %p700_p6 }
  0x4e   : > { %p707_p10 = por %p706_p8, %p705_p5 }
  0x50   : > { %p708_p11 = pnand %p707_p10, %p701_p9 }
  0x52   : > { %711 = shalt.err (!%p708_p11)
}
  0x53   : > { %s712_s6 = scalar_lea.vmem %s213_s15, 128  ;;  %s789_s26 = smov [#allocation4]  }
  0x54   : > { %p713_p13 = scmp.ne.s32.totalorder %s213_s15, %s712_s6  ;;  %s717_s9 = sshll.u32 %s789_s26, 4  ;;  %s718_s9 = int_to_ptr.vmem [resolvable:$false] %s717_s9 }
  0x55   : > { %s719_s13 = scalar_lea.vmem %s718_s9, 256  ;;  %p720_p0 = scmp.lt.s32.totalorder %s213_s15, %s718_s9 }
  0x56   : > { %p715_p2 = pnand %p713_p13, %p669_p12  ;;  %p721_p6 = scmp.lt.s32.totalorder %s719_s13, %s712_s6 }
  0x58   : > { %p716_p3 = pneg %p715_p2  ;;  %p722_p1 = por %p721_p6, %p720_p0 }
  0x5a   : > { %p723_p4 = pnand %p722_p1, %p716_p3 }
  0x5c   : > { %726 = shalt.err (!%p723_p4)
}
  0x5d   : > { %583 = dma.hbm_to_vmem [thread:$0]  (!%p921_p7), %s930_s12, 128, %s213_s15, %s201_s7  }
  0x5e   : > { %p1049_p9 = scmp.ne.s32.totalorder %s1044_s24, 0 }
  0x5f   : > { %s223_s11 = sand.u32 (!%p1049_p9), 1, %s769_s16   ;;  %p1050_p12 = scmp.ne.s32.totalorder (!%p1049_p9), %s1043_s23, 0 }
  0x60   : > { %221 = sbr.rel (%p1049_p9) target bundleno = 489 (0x1e9), region = 32  ;;  %s542_s14 = sshll.u32 (!%p1049_p9), %s223_s11, 3 }
  0x61   : > { %s224_s8 = scalar_lea.sflag (!%p1049_p9), [#allocation3], %s223_s11  ;;  %s227_s30 = scalar_lea.vmem (!%p1049_p9), [#allocation2], %s542_s14 }
  0x67   : > { %752 = dma.done.wait (%p1050_p12), %s224_s8, 128  }
  0x68   : > { %754 = vsyncadd (%p1050_p12), %s224_s8, 4294967168  ;;  %s1051_s25 = sadd.s32 4294967295, %s785_s20   ;;  %s236_s12 = scalar_lea.vmem [#allocation4], %s542_s14 }
  0x69   : > { %s232_s10 = sand.u32 1, %s1051_s25  }
  0x6a   : > { %s233_s27 = scalar_lea.sflag [#allocation5], %s232_s10 }
  0x6b   : > { %756 = dma.done.wait (%p1050_p12), %s233_s27, 128  }
  0x6c   : > { %758 = vsyncadd (%p1050_p12), %s233_s27, 4294967168  ;;  %p1052_p7 = scmp.ne.s32.totalorder %s1042_s22, 0 }
  0x6e   : > { %760 = dma.done.wait (%p1052_p7), [#allocation5], 128  }
  0x6f   : > { %762 = vsyncadd (%p1052_p7), [#allocation5], 4294967168  ;;  %p265_p5 = scmp.eq.s32.totalorder %s777_s18, 0 }
  0x70   : > { %vm271_vm0 = vcmask (%p265_p5), 7168   ;;  %v790_v0 = vmov (%p265_p5), 0.0  }
  0x71   : > { %270 = sbr.rel (!%p265_p5) target bundleno = 120 (0x78), region = 48  ;;  %272 = vst.msk [vmem:[%s1035_s3] sm:$0xff] (%p265_p5), %vm271_vm0, %v790_v0  ;;  %273 = vst.msk [vmem:[%s1036_s4] sm:$0xff] (%p265_p5), %vm271_vm0, %v790_v0 }
  0x78 PF: > { %v275_v1 = vld [vmem:[%s227_s30] sm:$0xff]  ;;  %vm276_vm1 = vcmask 64512   ;;  %v350_v3 = vld [vmem:[%s236_s12] sm:$0xff]  ;;  %v791_v4 = vmov 0.0   ;;  %vm792_vm2 = vmmov 0   ;;  %vm422_vm3 = vcmask 72704  }
  0x79   : > { %v274_v2 = vld [vmem:[#allocation6] sm:$0xff]  ;;  %555 = vmatprep.subr.mxu0 %v791_v4  ;;  %557 = vmatprep.mubr.msk.f32.mxu0 %vm792_vm2, %v791_v4  ;;  %vm431_vm4 = vcmask 7168  }
  0x7a   : > { %556 = vmatpush3.msra.mxu0 %v275_v1  ;;  %560 = vmatprep.subr.mxu1 %v791_v4  ;;  %v421_v17 = vld [vmem:[%s1035_s3] sm:$0xff] }
  0x7b   : > { %558 = vmatmul.mubr.msk.f32.vlgmr.msra.gmra.mrb[0].mxu0 %vm276_vm1, %v274_v2  ;;  %561 = vmatpush3.msra.mxu1 %v350_v3  ;;  %v433_v20 = vld [vmem:[%s1036_s4] sm:$0xff] }
  0x7c   : > { %562 = vmatprep.mubr.msk.f32.mxu1 %vm792_vm2, %v791_v4 }
  0x7d   : > { %563 = vmatmul.mubr.msk.f32.vlgmr.msra.gmra.mrb[0].mxu1 %vm276_vm1, %v274_v2 }
 0x14e   : > { %v346_v5 = vpop.f32.mrb[0].mxu0 }
 0x14f   : > { %v559_v6 = vpop.f32.mrb[1].mxu0  ;;  %v423_v7 = vsel %vm422_vm3, %v346_v5, 0.0  ;;  %v434_v8 = vmul.f32 %v346_v5, %v346_v5 }
 0x150   : > { %424 = vadd.xlane.f32.xlu0 %v423_v7  ;;  %v417_v9 = vpop.f32.mrb[0].mxu1 }
 0x151   : > { %v438_v10 = vmul.f32 %v417_v9, %v417_v9  ;;  %v564_v11 = vpop.f32.mrb[1].mxu1  ;;  %v435_v12 = vsel %vm422_vm3, %v434_v8, 0.0  ;;  %v426_v13 = vsel %vm422_vm3, %v417_v9, 0.0 }
 0x152   : > { %436 = vadd.xlane.f32.xlu1 %v435_v12 }
 0x153   : > { %v439_v14 = vsel %vm422_vm3, %v438_v10, 0.0 }
 0x154   : > { %427 = vadd.xlane.f32.xlu0 %v426_v13 }
 0x156   : > { %440 = vadd.xlane.f32.xlu1 %v439_v14 }
 0x1dd   : > { %v425_v15 = vpop.xlane.xlu0 %424 }
 0x1df   : > { %v437_v16 = vpop.xlane.xlu1 %436 }
 0x1e1   : > { %v428_v18 = vpop.xlane.xlu0 %427 }
 0x1e2   : > { %v429_v19 = vadd.f32 %v428_v18, %v425_v15 }
 0x1e3   : > { %v441_v21 = vpop.xlane.xlu1 %440 }
 0x1e4   : > { %v430_v22 = vadd.f32 %v429_v19, %v421_v17  ;;  %v442_v23 = vadd.f32 %v441_v21, %v437_v16 }
 0x1e6   : > { %432 = vst.msk [vmem:[%s1035_s3] sm:$0xff] %vm431_vm4, %v430_v22  ;;  %v443_v24 = vadd.f32 %v442_v23, %v433_v20 }
 0x1e8   : > { %444 = vst.msk [vmem:[%s1036_s4] sm:$0xff] %vm431_vm4, %v443_v24 }
 0x1e9 PF: > { %s21_s20 = sadd.s32 1, %s785_s20   ;;  %s1053_s15 = smov %s769_s16 }
 0x1ea   : > { %p18_p8 = scmp.ge.s32.totalorder %s21_s20, 4   ;;  %s1054_s16 = smov %s773_s17 }
 0x1eb   : > { %s1055_s17 = smov %s911_s5  ;;  %s1056_s18 = smov %s781_s19 }
 0x1ec   : > { %s1057_s19 = smov %s1059_s28  ;;  %20 = sbr.rel (!%p18_p8) target bundleno = 6 (0x6), region = 97 }
 0x1f3   :  { %462 = vsyncpa [#allocation3], 1 }
 0x1f4   :  { %464 = vsyncpa [#allocation3 + $0x1], 1 }
 0x1f5   :  { %465 = vsyncpa [#allocation5], 1 }
 0x1f6   :  { %467 = vsyncpa [#allocation5 + $0x1], 1 }

</bundles_post_ra>
